<compile_context>
chip_gen: v5e
topology: v5e:2x2
jax: 0.10.0
libtpu: 0.0.40
codegen_flags: <defaults>
</compile_context>

<pallas_src>
import functools

import jax
import jax.numpy as jnp
from jax.experimental import pallas as pl
from jax.experimental.pallas import tpu as pltpu


def _round_up(n, m):
    return ((n + m - 1) // m) * m


def _vmem_tile_bytes(rows, cols, itemsize=4):
    # VMEM buffers are padded to (8, 128) f32 tiles.
    return _round_up(max(rows, 1), 8) * _round_up(max(cols, 1), 128) * itemsize


# ----------------------------------------------------------------------------
# Kernel: fused (Linear -> ReLU -> {Linear_value, Linear_mu}) on folded tiles.
# ----------------------------------------------------------------------------
def actor_critic_kernel(x_ref, w1_ref, b1_ref, w2v_ref, b2v_ref,
                        w2m_ref, b2m_ref, value_ref, mu_ref):
    x = x_ref[...]                                            # (tb_f, fold*in)
    h = jnp.dot(x, w1_ref[...], preferred_element_type=jnp.float32) + b1_ref[...]
    h = jnp.maximum(h, 0.0)                                   # (tb_f, fold*2H)
    value_ref[...] = (
        jnp.dot(h, w2v_ref[...], preferred_element_type=jnp.float32) + b2v_ref[...]
    )                                                         # (tb_f, fold)
    mu_ref[...] = (
        jnp.dot(h, w2m_ref[...], preferred_element_type=jnp.float32) + b2m_ref[...]
    )                                                         # (tb_f, fold*out)


# ----------------------------------------------------------------------------
# Wrapper-side one-time weight folding (no extra FLOPs or HBM passes in-kernel).
# ----------------------------------------------------------------------------
def _pack_folded_params(p, fold):
    hidden = p["wc1"].shape[1]
    num_outputs = p["wa2"].shape[1]
    eye = jnp.eye(fold, dtype=jnp.float32)

    w1 = jnp.concatenate([p["wc1"], p["wa1"]], axis=1)            # (in, 2H)
    b1 = jnp.concatenate([p["bc1"], p["ba1"]], axis=1)            # (1, 2H)
    # Per-group layer-2 blocks: h-group layout is [h_critic | h_actor].
    w2v_blk = jnp.concatenate(
        [p["wc2"], jnp.zeros((hidden, 1), jnp.float32)], axis=0)  # (2H, 1)
    w2m_blk = jnp.concatenate(
        [jnp.zeros((hidden, num_outputs), jnp.float32), p["wa2"]], axis=0)  # (2H, out)

    w1_f = jnp.kron(eye, w1)        # (fold*in,  fold*2H)   block-diagonal
    w2v_f = jnp.kron(eye, w2v_blk)  # (fold*2H,  fold)
    w2m_f = jnp.kron(eye, w2m_blk)  # (fold*2H,  fold*out)
    b1_f = jnp.tile(b1, (1, fold))
    b2v_f = jnp.tile(p["bc2"], (1, fold))
    b2m_f = jnp.tile(p["ba2"], (1, fold))
    return w1_f, b1_f, w2v_f, b2v_f, w2m_f, b2m_f


@functools.partial(jax.jit, static_argnames=("tile_b", "min_grid_steps"))
def actor_critic_forward(x, params, *, tile_b=16384, min_grid_steps=2):
    """ActorCritic forward.  Returns (mu, std, value) where std has shape
    (1, num_outputs) (broadcastable against mu, matching expand_as-as-view)."""
    batch, num_inputs = x.shape
    hidden = params["wc1"].shape[1]
    num_outputs = params["wa2"].shape[1]

    # Fold `fold` batch rows into the lane dimension so every stream is
    # lane-dense.  HBM bytes are unchanged; the reshapes are free (row-major).
    fold = max(1, 128 // num_inputs)
    lane_in = fold * num_inputs
    col_h = fold * 2 * hidden
    col_v = fold
    col_m = fold * num_outputs

    w1_f, b1_f, w2v_f, b2v_f, w2m_f, b2m_f = _pack_folded_params(params, fold)

    # --- batch tiling over folded rows -------------------------------------
    rows_f = pl.cdiv(batch, fold)                  # folded rows needed
    rows_f8 = _round_up(rows_f, 8)
    tile_f = max(8, (tile_b // fold) // 8 * 8)     # user tile, multiple of 8
    tb_f = min(tile_f, rows_f8)
    # Keep >= min_grid_steps grid steps whenever the batch allows: both v7x
    # TensorCores get work and double-buffering actually overlaps.
    if rows_f8 >= min_grid_steps * 8:
        tb_f = min(tb_f, _round_up(pl.cdiv(rows_f8, min_grid_steps), 8))

    # Shrink the tile if the (double-buffered, lane-padded) VMEM estimate is
    # too large — stays well inside v7x's 64 MiB physical VMEM.
    vmem_budget = 24 << 20

    def vmem_estimate(t):
        per_step = (_vmem_tile_bytes(t, lane_in)
                    + _vmem_tile_bytes(t, col_v)
                    + _vmem_tile_bytes(t, col_m))
        weights = (_vmem_tile_bytes(lane_in, col_h) + _vmem_tile_bytes(1, col_h)
                   + _vmem_tile_bytes(col_h, col_v) + _vmem_tile_bytes(1, col_v)
                   + _vmem_tile_bytes(col_h, col_m) + _vmem_tile_bytes(1, col_m))
        return 2 * (per_step + weights)

    while tb_f > 8 and vmem_estimate(tb_f) > vmem_budget:
        tb_f = max(8, (tb_f // 2) // 8 * 8)

    padded_f = _round_up(rows_f, tb_f)
    grid = (padded_f // tb_f,)
    padded_batch = padded_f * fold

    # --- fold x (pads rows only when batch is not tile-aligned) ------------
    x_p = x if padded_batch == batch else jnp.pad(
        x, ((0, padded_batch - batch), (0, 0)))
    x_f = x_p.reshape(padded_f, lane_in)           # free row-major reshape

    value_f, mu_f = pl.pallas_call(
        actor_critic_kernel,
        out_shape=(
            jax.ShapeDtypeStruct((padded_f, col_v), jnp.float32),
            jax.ShapeDtypeStruct((padded_f, col_m), jnp.float32),
        ),
        grid=grid,
        in_specs=[
            pl.BlockSpec((tb_f, lane_in), lambda i: (i, 0)),    # x tile (pipelined)
            pl.BlockSpec((lane_in, col_h), lambda i: (0, 0)),   # W1  (resident)
            pl.BlockSpec((1, col_h), lambda i: (0, 0)),         # b1  (resident)
            pl.BlockSpec((col_h, col_v), lambda i: (0, 0)),     # W2 value
            pl.BlockSpec((1, col_v), lambda i: (0, 0)),         # b2 value
            pl.BlockSpec((col_h, col_m), lambda i: (0, 0)),     # W2 mu
            pl.BlockSpec((1, col_m), lambda i: (0, 0)),         # b2 mu
        ],
        out_specs=(
            pl.BlockSpec((tb_f, col_v), lambda i: (i, 0)),
            pl.BlockSpec((tb_f, col_m), lambda i: (i, 0)),
        ),
        compiler_params=pltpu.CompilerParams(
            dimension_semantics=("parallel",),
            vmem_limit_bytes=32 << 20,
        ),
    )(x_f, w1_f, b1_f, w2v_f, b2v_f, w2m_f, b2m_f)

    # De-fold: these reshapes are free (identical row-major bytes); only the
    # batch-padding trim (when batch is not tile-aligned) costs a copy.
    value = value_f.reshape(padded_batch, 1)
    mu = mu_f.reshape(padded_batch, num_outputs)
    if padded_batch != batch:
        value = value[:batch]
        mu = mu[:batch]

    # Batch-independent std: no broadcast tensor is written to HBM.
    std = jnp.exp(params["log_std"])
    return mu, std, value


# ----------------------------------------------------------------------------
# Init + pure-JAX reference (mirrors the PyTorch module exactly).
# ----------------------------------------------------------------------------
def init_params(key, num_inputs, num_outputs, hidden_size, std=0.0):
    """Matches PyTorch init_weights: W ~ Normal(0, 0.1), b = 0.1, log_std = std."""
    ks = jax.random.split(key, 4)

    def lin(k, fan_in, fan_out):
        # stored as [in, out] so the kernel computes x @ W + b
        w = 0.1 * jax.random.normal(k, (fan_in, fan_out), dtype=jnp.float32)
        b = jnp.full((1, fan_out), 0.1, dtype=jnp.float32)
        return w, b

    wc1, bc1 = lin(ks[0], num_inputs, hidden_size)
    wc2, bc2 = lin(ks[1], hidden_size, 1)
    wa1, ba1 = lin(ks[2], num_inputs, hidden_size)
    wa2, ba2 = lin(ks[3], hidden_size, num_outputs)
    log_std = jnp.full((1, num_outputs), std, dtype=jnp.float32)

    return dict(
        wc1=wc1, bc1=bc1, wc2=wc2, bc2=bc2,
        wa1=wa1, ba1=ba1, wa2=wa2, ba2=ba2,
        log_std=log_std,
    )


def reference_forward(x, p):
    h_c = jnp.maximum(x @ p["wc1"] + p["bc1"], 0.0)
    value = h_c @ p["wc2"] + p["bc2"]
    h_a = jnp.maximum(x @ p["wa1"] + p["ba1"], 0.0)
    mu = h_a @ p["wa2"] + p["ba2"]
    std = jnp.broadcast_to(jnp.exp(p["log_std"]), mu.shape)
    return mu, std, value


if __name__ == "__main__":
    num_inputs, num_outputs, hidden_size = 16, 4, 32

    key = jax.random.PRNGKey(0)
    k_param, k_x1, k_x2 = jax.random.split(key, 3)
    params = init_params(k_param, num_inputs, num_outputs, hidden_size, std=0.0)

    # --- small batch (grid collapses to 1 step, exercises fold padding) ----
    batch = 8
    x = jax.random.normal(k_x1, (batch, num_inputs), dtype=jnp.float32)
    mu, std, value = actor_critic_forward(x, params)
    jax.block_until_ready((mu, std, value))

    mu_r, std_r, value_r = reference_forward(x, params)
    assert mu.shape == (batch, num_outputs)
    assert value.shape == (batch, 1)
    assert std.shape == (1, num_outputs)
    assert jnp.allclose(mu, mu_r, atol=1e-5, rtol=1e-5), "mu mismatch"
    assert jnp.allclose(jnp.broadcast_to(std, mu.shape), std_r,
                        atol=1e-5, rtol=1e-5), "std mismatch"
    assert jnp.allclose(value, value_r, atol=1e-5, rtol=1e-5), "value mismatch"

    # --- ragged batch: exercises folding, grid > 1 and batch padding -------
    batch2 = 300
    x2 = jax.random.normal(k_x2, (batch2, num_inputs), dtype=jnp.float32)
    mu2, std2, value2 = actor_critic_forward(x2, params, tile_b=128)
    jax.block_until_ready((mu2, std2, value2))

    mu2_r, std2_r, value2_r = reference_forward(x2, params)
    assert mu2.shape == (batch2, num_outputs)
    assert value2.shape == (batch2, 1)
    assert jnp.allclose(mu2, mu2_r, atol=1e-5, rtol=1e-5), "mu mismatch (gridded)"
    assert jnp.allclose(jnp.broadcast_to(std2, mu2.shape), std2_r,
                        atol=1e-5, rtol=1e-5), "std mismatch (gridded)"
    assert jnp.allclose(value2, value2_r, atol=1e-5, rtol=1e-5), "value mismatch (gridded)"

    print("KERNEL_OK")
</pallas_src>

<mosaic_0001>
module attributes {stable_mosaic.version = 11 : i64} {
  func.func @actor_critic_kernel(%arg0: i32, %arg1: memref<8x128xf32, #tpu.memory_space<vmem>>, %arg2: memref<128x512xf32, #tpu.memory_space<vmem>>, %arg3: memref<1x512xf32, #tpu.memory_space<vmem>>, %arg4: memref<512x8xf32, #tpu.memory_space<vmem>>, %arg5: memref<1x8xf32, #tpu.memory_space<vmem>>, %arg6: memref<512x32xf32, #tpu.memory_space<vmem>>, %arg7: memref<1x32xf32, #tpu.memory_space<vmem>>, %arg8: memref<8x8xf32, #tpu.memory_space<vmem>>, %arg9: memref<8x32xf32, #tpu.memory_space<vmem>>) attributes {dimension_semantics = [#tpu.dimension_semantics<parallel>], iteration_bounds = array<i64: 1>, scalar_prefetch = 0 : i64, scratch_operands = 0 : i64, tpu.core_type = #tpu.core_type<tc>, window_params = [{transform_indices = @transform_0, window_bounds = array<i64: 8, 128>}, {pipeline_mode = #tpu.pipeline_mode<synchronous>, transform_indices = @transform_1, window_bounds = array<i64: 128, 512>}, {pipeline_mode = #tpu.pipeline_mode<synchronous>, transform_indices = @transform_2, window_bounds = array<i64: 1, 512>}, {pipeline_mode = #tpu.pipeline_mode<synchronous>, transform_indices = @transform_3, window_bounds = array<i64: 512, 8>}, {pipeline_mode = #tpu.pipeline_mode<synchronous>, transform_indices = @transform_4, window_bounds = array<i64: 1, 8>}, {pipeline_mode = #tpu.pipeline_mode<synchronous>, transform_indices = @transform_5, window_bounds = array<i64: 512, 32>}, {pipeline_mode = #tpu.pipeline_mode<synchronous>, transform_indices = @transform_6, window_bounds = array<i64: 1, 32>}, {transform_indices = @transform_7, window_bounds = array<i64: 8, 8>}, {transform_indices = @transform_8, window_bounds = array<i64: 8, 32>}]} {
    %c0 = arith.constant 0 : index
    %c0_0 = arith.constant 0 : index
    %0 = vector.load %arg1[%c0, %c0_0] : memref<8x128xf32, #tpu.memory_space<vmem>>, vector<8x128xf32>
    %c0_1 = arith.constant 0 : index
    %c0_2 = arith.constant 0 : index
    %1 = vector.load %arg2[%c0_1, %c0_2] : memref<128x512xf32, #tpu.memory_space<vmem>>, vector<128x512xf32>
    %cst = arith.constant dense<0.000000e+00> : vector<8x512xf32>
    %2 = tpu.matmul %0, %1, %cst {dimension_numbers = #tpu.dot_dimension_numbers<[1], [0], [0], [1], [0, 0, 1, 1], [], []>} : vector<8x128xf32>, vector<128x512xf32>, vector<8x512xf32> -> vector<8x512xf32>
    %c0_3 = arith.constant 0 : index
    %c0_4 = arith.constant 0 : index
    %3 = vector.load %arg3[%c0_3, %c0_4] : memref<1x512xf32, #tpu.memory_space<vmem>>, vector<1x512xf32>
    %4 = vector.broadcast %3 : vector<1x512xf32> to vector<8x512xf32>
    %5 = arith.addf %2, %4 : vector<8x512xf32>
    %cst_5 = arith.constant 0.000000e+00 : f32
    %6 = vector.broadcast %cst_5 : f32 to vector<8x512xf32>
    %7 = arith.maximumf %5, %6 : vector<8x512xf32>
    %c0_6 = arith.constant 0 : index
    %c0_7 = arith.constant 0 : index
    %8 = vector.load %arg4[%c0_6, %c0_7] : memref<512x8xf32, #tpu.memory_space<vmem>>, vector<512x8xf32>
    %cst_8 = arith.constant dense<0.000000e+00> : vector<8x8xf32>
    %9 = tpu.matmul %7, %8, %cst_8 {dimension_numbers = #tpu.dot_dimension_numbers<[1], [0], [0], [1], [0, 0, 1, 1], [], []>} : vector<8x512xf32>, vector<512x8xf32>, vector<8x8xf32> -> vector<8x8xf32>
    %c0_9 = arith.constant 0 : index
    %c0_10 = arith.constant 0 : index
    %10 = vector.load %arg5[%c0_9, %c0_10] : memref<1x8xf32, #tpu.memory_space<vmem>>, vector<1x8xf32>
    %11 = vector.broadcast %10 : vector<1x8xf32> to vector<8x8xf32>
    %12 = arith.addf %9, %11 : vector<8x8xf32>
    %c0_11 = arith.constant 0 : index
    %c0_12 = arith.constant 0 : index
    %13 = vector.load %arg8[%c0_11, %c0_12] : memref<8x8xf32, #tpu.memory_space<vmem>>, vector<8x8xf32>
    tpu.vector_store %arg8[%c0_11, %c0_12], %12 {strides = array<i32>} : memref<8x8xf32, #tpu.memory_space<vmem>>, vector<8x8xf32>,
    %c0_13 = arith.constant 0 : index
    %c0_14 = arith.constant 0 : index
    %14 = vector.load %arg6[%c0_13, %c0_14] : memref<512x32xf32, #tpu.memory_space<vmem>>, vector<512x32xf32>
    %cst_15 = arith.constant dense<0.000000e+00> : vector<8x32xf32>
    %15 = tpu.matmul %7, %14, %cst_15 {dimension_numbers = #tpu.dot_dimension_numbers<[1], [0], [0], [1], [0, 0, 1, 1], [], []>} : vector<8x512xf32>, vector<512x32xf32>, vector<8x32xf32> -> vector<8x32xf32>
    %c0_16 = arith.constant 0 : index
    %c0_17 = arith.constant 0 : index
    %16 = vector.load %arg7[%c0_16, %c0_17] : memref<1x32xf32, #tpu.memory_space<vmem>>, vector<1x32xf32>
    %17 = vector.broadcast %16 : vector<1x32xf32> to vector<8x32xf32>
    %18 = arith.addf %15, %17 : vector<8x32xf32>
    %c0_18 = arith.constant 0 : index
    %c0_19 = arith.constant 0 : index
    %19 = vector.load %arg9[%c0_18, %c0_19] : memref<8x32xf32, #tpu.memory_space<vmem>>, vector<8x32xf32>
    tpu.vector_store %arg9[%c0_18, %c0_19], %18 {strides = array<i32>} : memref<8x32xf32, #tpu.memory_space<vmem>>, vector<8x32xf32>,
    return
  }
  func.func @transform_0(%arg0: i32) -> (i32, i32) {
    %c0_i32 = arith.constant 0 : i32
    %c0_i32_0 = arith.constant 0 : i32
    return %arg0, %c0_i32 : i32, i32
  }
  func.func @transform_1(%arg0: i32) -> (i32, i32) {
    %c0_i32 = arith.constant 0 : i32
    %c0_i32_0 = arith.constant 0 : i32
    %c0_i32_1 = arith.constant 0 : i32
    return %c0_i32, %c0_i32_0 : i32, i32
  }
  func.func @transform_2(%arg0: i32) -> (i32, i32) {
    %c0_i32 = arith.constant 0 : i32
    %c0_i32_0 = arith.constant 0 : i32
    %c0_i32_1 = arith.constant 0 : i32
    return %c0_i32, %c0_i32_0 : i32, i32
  }
  func.func @transform_3(%arg0: i32) -> (i32, i32) {
    %c0_i32 = arith.constant 0 : i32
    %c0_i32_0 = arith.constant 0 : i32
    %c0_i32_1 = arith.constant 0 : i32
    return %c0_i32, %c0_i32_0 : i32, i32
  }
  func.func @transform_4(%arg0: i32) -> (i32, i32) {
    %c0_i32 = arith.constant 0 : i32
    %c0_i32_0 = arith.constant 0 : i32
    %c0_i32_1 = arith.constant 0 : i32
    return %c0_i32, %c0_i32_0 : i32, i32
  }
  func.func @transform_5(%arg0: i32) -> (i32, i32) {
    %c0_i32 = arith.constant 0 : i32
    %c0_i32_0 = arith.constant 0 : i32
    %c0_i32_1 = arith.constant 0 : i32
    return %c0_i32, %c0_i32_0 : i32, i32
  }
  func.func @transform_6(%arg0: i32) -> (i32, i32) {
    %c0_i32 = arith.constant 0 : i32
    %c0_i32_0 = arith.constant 0 : i32
    %c0_i32_1 = arith.constant 0 : i32
    return %c0_i32, %c0_i32_0 : i32, i32
  }
  func.func @transform_7(%arg0: i32) -> (i32, i32) {
    %c0_i32 = arith.constant 0 : i32
    %c0_i32_0 = arith.constant 0 : i32
    return %arg0, %c0_i32 : i32, i32
  }
  func.func @transform_8(%arg0: i32) -> (i32, i32) {
    %c0_i32 = arith.constant 0 : i32
    %c0_i32_0 = arith.constant 0 : i32
    return %arg0, %c0_i32 : i32, i32
  }
}

</mosaic_0001>

<bundles_post_ra>
// kernel: actor_critic_forward.1
= control target key start
LH: loop header
LB: loop body
LE: loop exit
PB: predicated region body
PF: predicated region fallthrough
CT: control target
= control target key end

     0   :  { %vm335_vm0 = vcmask 64512   ;;  %vm485_vm1 = vcmask 261120   ;;  %s1136_s1 = inlined_call_operand.vmem [shape: f32[128,512], index: 1, kind: input, shape index: {}]   ;;  %s1137_s0 = inlined_call_operand.vmem [shape: f32[8,128], index: 0, kind: input, shape index: {}]   ;;  %s1138_s3 = inlined_call_operand.vmem [shape: f32[512,8], index: 3, kind: input, shape index: {}]   ;;  %s1139_s4 = inlined_call_operand.vmem [shape: f32[1,8], index: 4, kind: input, shape index: {}]   ;;  %s1140_s5 = inlined_call_operand.vmem [shape: f32[512,32], index: 5, kind: input, shape index: {}]   ;;  %s1141_s2 = inlined_call_operand.vmem [shape: f32[1,512], index: 2, kind: input, shape index: {}]   ;;  %s1142_s6 = inlined_call_operand.vmem [shape: f32[1,32], index: 6, kind: input, shape index: {}]   ;;  %s1143_s7 = inlined_call_operand.vmem [shape: f32[8,8], index: 7, kind: output, shape index: {0}]   ;;  %s1144_s8 = inlined_call_operand.vmem [shape: f32[8,32], index: 8, kind: output, shape index: {1}]  }
   0x1   :  { %v89_v0 = vld [vmem:[%s1136_s1 + $0x1e0] sm:$0xff]  ;;  %v91_v1 = vld [vmem:[%s1136_s1 + $0x1f0] sm:$0xff]  ;;  %v92_v2 = vld [vmem:[%s1136_s1 + $0x1f8] sm:$0xff] }
   0x2   :  { %103 = vmatpush.msra.mxu0 %v89_v0  ;;  %143 = vmatpush.msra.mxu2 %v91_v1  ;;  %v85_v3 = vld [vmem:[%s1136_s1 + $0x1c0] sm:$0xff]  ;;  %v90_v4 = vld [vmem:[%s1136_s1 + $0x1e8] sm:$0xff]  ;;  %v87_v5 = vld [vmem:[%s1136_s1 + $0x1d0] sm:$0xff] }
   0x3   :  { %163 = vmatpush.msra.mxu3 %v92_v2  ;;  %123 = vmatpush.msra.mxu1 %v90_v4  ;;  %v88_v6 = vld [vmem:[%s1136_s1 + $0x1d8] sm:$0xff]  ;;  %v81_v7 = vld [vmem:[%s1136_s1 + $0x1a0] sm:$0xff]  ;;  %v86_v8 = vld [vmem:[%s1136_s1 + $0x1c8] sm:$0xff] }
   0x4   :  { %104 = vmatpush.msra.mxu0 %v85_v3  ;;  %144 = vmatpush.msra.mxu2 %v87_v5  ;;  %v83_v9 = vld [vmem:[%s1136_s1 + $0x1b0] sm:$0xff]  ;;  %v84_v10 = vld [vmem:[%s1136_s1 + $0x1b8] sm:$0xff]  ;;  %v77_v11 = vld [vmem:[%s1136_s1 + $0x180] sm:$0xff] }
   0x5   :  { %164 = vmatpush.msra.mxu3 %v88_v6  ;;  %124 = vmatpush.msra.mxu1 %v86_v8  ;;  %v82_v12 = vld [vmem:[%s1136_s1 + $0x1a8] sm:$0xff]  ;;  %v79_v13 = vld [vmem:[%s1136_s1 + $0x190] sm:$0xff]  ;;  %v80_v14 = vld [vmem:[%s1136_s1 + $0x198] sm:$0xff] }
   0x6   :  { %105 = vmatpush.msra.mxu0 %v81_v7  ;;  %145 = vmatpush.msra.mxu2 %v83_v9  ;;  %v78_v15 = vld [vmem:[%s1136_s1 + $0x188] sm:$0xff]  ;;  %v73_v16 = vld [vmem:[%s1136_s1 + $0x160] sm:$0xff]  ;;  %v75_v17 = vld [vmem:[%s1136_s1 + $0x170] sm:$0xff] }
   0x7   :  { %165 = vmatpush.msra.mxu3 %v84_v10  ;;  %125 = vmatpush.msra.mxu1 %v82_v12  ;;  %v76_v18 = vld [vmem:[%s1136_s1 + $0x178] sm:$0xff]  ;;  %v74_v19 = vld [vmem:[%s1136_s1 + $0x168] sm:$0xff]  ;;  %v69_v20 = vld [vmem:[%s1136_s1 + $0x140] sm:$0xff] }
   0x8   :  { %106 = vmatpush.msra.mxu0 %v77_v11  ;;  %146 = vmatpush.msra.mxu2 %v79_v13  ;;  %v71_v21 = vld [vmem:[%s1136_s1 + $0x150] sm:$0xff]  ;;  %v72_v22 = vld [vmem:[%s1136_s1 + $0x158] sm:$0xff]  ;;  %v70_v23 = vld [vmem:[%s1136_s1 + $0x148] sm:$0xff] }
   0x9   :  { %166 = vmatpush.msra.mxu3 %v80_v14  ;;  %126 = vmatpush.msra.mxu1 %v78_v15  ;;  %v65_v24 = vld [vmem:[%s1136_s1 + $0x120] sm:$0xff]  ;;  %v67_v25 = vld [vmem:[%s1136_s1 + $0x130] sm:$0xff]  ;;  %v68_v26 = vld [vmem:[%s1136_s1 + $0x138] sm:$0xff] }
   0xa   :  { %107 = vmatpush.msra.mxu0 %v73_v16  ;;  %147 = vmatpush.msra.mxu2 %v75_v17  ;;  %v66_v27 = vld [vmem:[%s1136_s1 + $0x128] sm:$0xff]  ;;  %v61_v28 = vld [vmem:[%s1136_s1 + $0x100] sm:$0xff]  ;;  %v63_v29 = vld [vmem:[%s1136_s1 + $0x110] sm:$0xff] }
   0xb   :  { %167 = vmatpush.msra.mxu3 %v76_v18  ;;  %127 = vmatpush.msra.mxu1 %v74_v19  ;;  %v64_v30 = vld [vmem:[%s1136_s1 + $0x118] sm:$0xff]  ;;  %v62_v31 = vld [vmem:[%s1136_s1 + $0x108] sm:$0xff]  ;;  %v57_v32 = vld [vmem:[%s1136_s1 + $0xe0] sm:$0xff] }
   0xc   :  { %108 = vmatpush.msra.mxu0 %v69_v20  ;;  %148 = vmatpush.msra.mxu2 %v71_v21  ;;  %v59_v33 = vld [vmem:[%s1136_s1 + $0xf0] sm:$0xff]  ;;  %v60_v34 = vld [vmem:[%s1136_s1 + $0xf8] sm:$0xff]  ;;  %v58_v35 = vld [vmem:[%s1136_s1 + $0xe8] sm:$0xff] }
   0xd   :  { %168 = vmatpush.msra.mxu3 %v72_v22  ;;  %128 = vmatpush.msra.mxu1 %v70_v23  ;;  %v53_v36 = vld [vmem:[%s1136_s1 + $0xc0] sm:$0xff]  ;;  %v55_v37 = vld [vmem:[%s1136_s1 + $0xd0] sm:$0xff]  ;;  %v56_v38 = vld [vmem:[%s1136_s1 + $0xd8] sm:$0xff] }
   0xe   :  { %109 = vmatpush.msra.mxu0 %v65_v24  ;;  %149 = vmatpush.msra.mxu2 %v67_v25  ;;  %v54_v39 = vld [vmem:[%s1136_s1 + $0xc8] sm:$0xff]  ;;  %v49_v40 = vld [vmem:[%s1136_s1 + $0xa0] sm:$0xff]  ;;  %v51_v41 = vld [vmem:[%s1136_s1 + $0xb0] sm:$0xff] }
   0xf   :  { %169 = vmatpush.msra.mxu3 %v68_v26  ;;  %129 = vmatpush.msra.mxu1 %v66_v27  ;;  %v52_v42 = vld [vmem:[%s1136_s1 + $0xb8] sm:$0xff]  ;;  %v50_v43 = vld [vmem:[%s1136_s1 + $0xa8] sm:$0xff]  ;;  %v45_v44 = vld [vmem:[%s1136_s1 + $0x80] sm:$0xff] }
  0x10   :  { %110 = vmatpush.msra.mxu0 %v61_v28  ;;  %150 = vmatpush.msra.mxu2 %v63_v29  ;;  %v47_v45 = vld [vmem:[%s1136_s1 + $0x90] sm:$0xff]  ;;  %v48_v46 = vld [vmem:[%s1136_s1 + $0x98] sm:$0xff]  ;;  %v46_v47 = vld [vmem:[%s1136_s1 + $0x88] sm:$0xff] }
  0x11   :  { %170 = vmatpush.msra.mxu3 %v64_v30  ;;  %130 = vmatpush.msra.mxu1 %v62_v31  ;;  %v41_v48 = vld [vmem:[%s1136_s1 + $0x60] sm:$0xff]  ;;  %v43_v49 = vld [vmem:[%s1136_s1 + $0x70] sm:$0xff]  ;;  %v44_v50 = vld [vmem:[%s1136_s1 + $0x78] sm:$0xff] }
  0x12   :  { %111 = vmatpush.msra.mxu0 %v57_v32  ;;  %151 = vmatpush.msra.mxu2 %v59_v33  ;;  %v42_v51 = vld [vmem:[%s1136_s1 + $0x68] sm:$0xff]  ;;  %v37_v52 = vld [vmem:[%s1136_s1 + $0x40] sm:$0xff]  ;;  %v39_v53 = vld [vmem:[%s1136_s1 + $0x50] sm:$0xff] }
  0x13   :  { %171 = vmatpush.msra.mxu3 %v60_v34  ;;  %131 = vmatpush.msra.mxu1 %v58_v35  ;;  %v40_v54 = vld [vmem:[%s1136_s1 + $0x58] sm:$0xff]  ;;  %v38_v55 = vld [vmem:[%s1136_s1 + $0x48] sm:$0xff]  ;;  %v33_v56 = vld [vmem:[%s1136_s1 + $0x20] sm:$0xff] }
  0x14   :  { %112 = vmatpush.msra.mxu0 %v53_v36  ;;  %152 = vmatpush.msra.mxu2 %v55_v37  ;;  %v35_v57 = vld [vmem:[%s1136_s1 + $0x30] sm:$0xff]  ;;  %v36_v58 = vld [vmem:[%s1136_s1 + $0x38] sm:$0xff]  ;;  %v34_v59 = vld [vmem:[%s1136_s1 + $0x28] sm:$0xff] }
  0x15   :  { %172 = vmatpush.msra.mxu3 %v56_v38  ;;  %132 = vmatpush.msra.mxu1 %v54_v39  ;;  %v29_v60 = vld [vmem:[%s1136_s1] sm:$0xff]  ;;  %v31_v61 = vld [vmem:[%s1136_s1 + $0x10] sm:$0xff]  ;;  %v32_v62 = vld [vmem:[%s1136_s1 + $0x18] sm:$0xff] }
  0x16   :  { %113 = vmatpush.msra.mxu0 %v49_v40  ;;  %153 = vmatpush.msra.mxu2 %v51_v41  ;;  %v28_v63 = vld [vmem:[%s1137_s0] sm:$0xff]  ;;  %v30_v0 = vld [vmem:[%s1136_s1 + $0x8] sm:$0xff]  ;;  %v202_v1 = vld [vmem:[%s1138_s3 + $0x78] sm:$0xff] }
  0x17   :  { %173 = vmatpush.msra.mxu3 %v52_v42  ;;  %133 = vmatpush.msra.mxu1 %v50_v43  ;;  %v234_v2 = vld [vmem:[%s1138_s3 + $0x178] sm:$0xff]  ;;  %v201_v3 = vld [vmem:[%s1138_s3 + $0x70] sm:$0xff]  ;;  %v200_v7 = vld [vmem:[%s1138_s3 + $0x68] sm:$0xff] }
  0x18   :  { %114 = vmatpush.msra.mxu0 %v45_v44  ;;  %154 = vmatpush.msra.mxu2 %v47_v45  ;;  %v218_v4 = vld [vmem:[%s1138_s3 + $0xf8] sm:$0xff]  ;;  %v233_v6 = vld [vmem:[%s1138_s3 + $0x170] sm:$0xff]  ;;  %v232_v10 = vld [vmem:[%s1138_s3 + $0x168] sm:$0xff] }
  0x19   :  { %174 = vmatpush.msra.mxu3 %v48_v46  ;;  %134 = vmatpush.msra.mxu1 %v46_v47  ;;  %v250_v5 = vld [vmem:[%s1138_s3 + $0x1f8] sm:$0xff]  ;;  %v217_v8 = vld [vmem:[%s1138_s3 + $0xf0] sm:$0xff]  ;;  %v199_v11 = vld [vmem:[%s1138_s3 + $0x60] sm:$0xff] }
  0x1a   :  { %115 = vmatpush.msra.mxu0 %v41_v48  ;;  %155 = vmatpush.msra.mxu2 %v43_v49  ;;  %v249_v9 = vld [vmem:[%s1138_s3 + $0x1f0] sm:$0xff]  ;;  %v216_v12 = vld [vmem:[%s1138_s3 + $0xe8] sm:$0xff]  ;;  %v231_v14 = vld [vmem:[%s1138_s3 + $0x160] sm:$0xff] }
  0x1b   :  { %175 = vmatpush.msra.mxu3 %v44_v50  ;;  %135 = vmatpush.msra.mxu1 %v42_v51  ;;  %v248_v13 = vld [vmem:[%s1138_s3 + $0x1e8] sm:$0xff]  ;;  %v198_v15 = vld [vmem:[%s1138_s3 + $0x58] sm:$0xff]  ;;  %v215_v16 = vld [vmem:[%s1138_s3 + $0xe0] sm:$0xff] }
  0x1c   :  { %116 = vmatpush.msra.mxu0 %v37_v52  ;;  %156 = vmatpush.msra.mxu2 %v39_v53  ;;  %v247_v17 = vld [vmem:[%s1138_s3 + $0x1e0] sm:$0xff]  ;;  %v230_v18 = vld [vmem:[%s1138_s3 + $0x158] sm:$0xff]  ;;  %v197_v19 = vld [vmem:[%s1138_s3 + $0x50] sm:$0xff] }
  0x1d   :  { %176 = vmatpush.msra.mxu3 %v40_v54  ;;  %136 = vmatpush.msra.mxu1 %v38_v55  ;;  %v214_v20 = vld [vmem:[%s1138_s3 + $0xd8] sm:$0xff]  ;;  %v229_v22 = vld [vmem:[%s1138_s3 + $0x150] sm:$0xff]  ;;  %v196_v23 = vld [vmem:[%s1138_s3 + $0x48] sm:$0xff] }
  0x1e   :  { %117 = vmatpush.msra.mxu0 %v33_v56  ;;  %157 = vmatpush.msra.mxu2 %v35_v57  ;;  %v246_v21 = vld [vmem:[%s1138_s3 + $0x1d8] sm:$0xff]  ;;  %v213_v24 = vld [vmem:[%s1138_s3 + $0xd0] sm:$0xff]  ;;  %v228_v26 = vld [vmem:[%s1138_s3 + $0x148] sm:$0xff] }
  0x1f   :  { %177 = vmatpush.msra.mxu3 %v36_v58  ;;  %137 = vmatpush.msra.mxu1 %v34_v59  ;;  %v245_v25 = vld [vmem:[%s1138_s3 + $0x1d0] sm:$0xff]  ;;  %v195_v27 = vld [vmem:[%s1138_s3 + $0x40] sm:$0xff]  ;;  %v212_v28 = vld [vmem:[%s1138_s3 + $0xc8] sm:$0xff] }
  0x20   :  { %118 = vmatpush.msra.mxu0 %v29_v60  ;;  %158 = vmatpush.msra.mxu2 %v31_v61  ;;  %v244_v29 = vld [vmem:[%s1138_s3 + $0x1c8] sm:$0xff]  ;;  %v227_v30 = vld [vmem:[%s1138_s3 + $0x140] sm:$0xff]  ;;  %v194_v31 = vld [vmem:[%s1138_s3 + $0x38] sm:$0xff] }
  0x21   :  { %178 = vmatpush.msra.mxu3 %v32_v62  ;;  %119 = vmatmul.f32.vlgmr.msra.gmra.mxu0 %v28_v63  ;;  %v211_v32 = vld [vmem:[%s1138_s3 + $0xc0] sm:$0xff]  ;;  %v226_v34 = vld [vmem:[%s1138_s3 + $0x138] sm:$0xff]  ;;  %v193_v35 = vld [vmem:[%s1138_s3 + $0x30] sm:$0xff] }
  0x22   :  { %159 = vmatmul.f32.vlgmr.msra.gmra.mxu2 %v28_v63  ;;  %179 = vmatmul.f32.vlgmr.msra.gmra.mxu3 %v28_v63  ;;  %v243_v33 = vld [vmem:[%s1138_s3 + $0x1c0] sm:$0xff]  ;;  %v210_v36 = vld [vmem:[%s1138_s3 + $0xb8] sm:$0xff]  ;;  %v225_v38 = vld [vmem:[%s1138_s3 + $0x130] sm:$0xff] }
  0x23   :  { %138 = vmatpush.msra.mxu1 %v30_v0  ;;  %255 = vmatpush.msrb.mxu0 %v202_v1  ;;  %v242_v37 = vld [vmem:[%s1138_s3 + $0x1b8] sm:$0xff]  ;;  %v192_v39 = vld [vmem:[%s1138_s3 + $0x28] sm:$0xff]  ;;  %v209_v40 = vld [vmem:[%s1138_s3 + $0xb0] sm:$0xff] }
  0x24   :  { %139 = vmatmul.f32.vlgmr.msra.gmra.mxu1 %v28_v63  ;;  %295 = vmatpush.msrb.mxu2 %v234_v2  ;;  %v241_v41 = vld [vmem:[%s1138_s3 + $0x1b0] sm:$0xff]  ;;  %v224_v42 = vld [vmem:[%s1138_s3 + $0x128] sm:$0xff]  ;;  %v191_v43 = vld [vmem:[%s1138_s3 + $0x20] sm:$0xff] }
  0x25   :  { %256 = vmatpush.msrb.mxu0 %v201_v3  ;;  %275 = vmatpush.msrb.mxu1 %v218_v4  ;;  %v208_v44 = vld [vmem:[%s1138_s3 + $0xa8] sm:$0xff]  ;;  %v223_v46 = vld [vmem:[%s1138_s3 + $0x120] sm:$0xff]  ;;  %v190_v47 = vld [vmem:[%s1138_s3 + $0x18] sm:$0xff] }
  0x26   :  { %315 = vmatpush.msrb.mxu3 %v250_v5  ;;  %296 = vmatpush.msrb.mxu2 %v233_v6  ;;  %v240_v45 = vld [vmem:[%s1138_s3 + $0x1a8] sm:$0xff]  ;;  %v207_v48 = vld [vmem:[%s1138_s3 + $0xa0] sm:$0xff]  ;;  %v222_v50 = vld [vmem:[%s1138_s3 + $0x118] sm:$0xff] }
  0x27   :  { %257 = vmatpush.msrb.mxu0 %v200_v7  ;;  %276 = vmatpush.msrb.mxu1 %v217_v8  ;;  %v239_v49 = vld [vmem:[%s1138_s3 + $0x1a0] sm:$0xff]  ;;  %v189_v51 = vld [vmem:[%s1138_s3 + $0x10] sm:$0xff]  ;;  %v206_v52 = vld [vmem:[%s1138_s3 + $0x98] sm:$0xff] }
  0x28   :  { %316 = vmatpush.msrb.mxu3 %v249_v9  ;;  %297 = vmatpush.msrb.mxu2 %v232_v10  ;;  %v238_v53 = vld [vmem:[%s1138_s3 + $0x198] sm:$0xff]  ;;  %v221_v54 = vld [vmem:[%s1138_s3 + $0x110] sm:$0xff]  ;;  %v188_v55 = vld [vmem:[%s1138_s3 + $0x8] sm:$0xff] }
  0x29   :  { %258 = vmatpush.msrb.mxu0 %v199_v11  ;;  %277 = vmatpush.msrb.mxu1 %v216_v12  ;;  %v205_v56 = vld [vmem:[%s1138_s3 + $0x90] sm:$0xff]  ;;  %v220_v58 = vld [vmem:[%s1138_s3 + $0x108] sm:$0xff]  ;;  %v187_v59 = vld [vmem:[%s1138_s3] sm:$0xff] }
  0x2a   :  { %317 = vmatpush.msrb.mxu3 %v248_v13  ;;  %298 = vmatpush.msrb.mxu2 %v231_v14  ;;  %v237_v57 = vld [vmem:[%s1138_s3 + $0x190] sm:$0xff]  ;;  %v204_v60 = vld [vmem:[%s1138_s3 + $0x88] sm:$0xff]  ;;  %v352_v61 = vld [vmem:[%s1140_s5 + $0x78] sm:$0xff] }
  0x2b   :  { %259 = vmatpush.msrb.mxu0 %v198_v15  ;;  %278 = vmatpush.msrb.mxu1 %v215_v16  ;;  %v236_v62 = vld [vmem:[%s1138_s3 + $0x188] sm:$0xff]  ;;  %v203_v63 = vld [vmem:[%s1138_s3 + $0x80] sm:$0xff]  ;;  %v351_v1 = vld [vmem:[%s1140_s5 + $0x70] sm:$0xff] }
  0x2c   :  { %318 = vmatpush.msrb.mxu3 %v247_v17  ;;  %299 = vmatpush.msrb.mxu2 %v230_v18  ;;  %v219_v0 = vld [vmem:[%s1138_s3 + $0x100] sm:$0xff]  ;;  %v368_v2 = vld [vmem:[%s1140_s5 + $0xf8] sm:$0xff]  ;;  %v350_v5 = vld [vmem:[%s1140_s5 + $0x68] sm:$0xff] }
  0x2d   :  { %260 = vmatpush.msrb.mxu0 %v197_v19  ;;  %279 = vmatpush.msrb.mxu1 %v214_v20  ;;  %v235_v3 = vld [vmem:[%s1138_s3 + $0x180] sm:$0xff]  ;;  %v384_v4 = vld [vmem:[%s1140_s5 + $0x178] sm:$0xff]  ;;  %v367_v6 = vld [vmem:[%s1140_s5 + $0xf0] sm:$0xff] }
  0x2e   :  { %319 = vmatpush.msrb.mxu3 %v246_v21  ;;  %300 = vmatpush.msrb.mxu2 %v229_v22  ;;  %v400_v7 = vld [vmem:[%s1140_s5 + $0x1f8] sm:$0xff]  ;;  %v383_v8 = vld [vmem:[%s1140_s5 + $0x170] sm:$0xff]  ;;  %v349_v9 = vld [vmem:[%s1140_s5 + $0x60] sm:$0xff] }
  0x2f   :  { %261 = vmatpush.msrb.mxu0 %v196_v23  ;;  %280 = vmatpush.msrb.mxu1 %v213_v24  ;;  %v366_v10 = vld [vmem:[%s1140_s5 + $0xe8] sm:$0xff]  ;;  %v399_v11 = vld [vmem:[%s1140_s5 + $0x1f0] sm:$0xff]  ;;  %v348_v13 = vld [vmem:[%s1140_s5 + $0x58] sm:$0xff] }
  0x30   :  { %320 = vmatpush.msrb.mxu3 %v245_v25  ;;  %301 = vmatpush.msrb.mxu2 %v228_v26  ;;  %v382_v12 = vld [vmem:[%s1140_s5 + $0x168] sm:$0xff]  ;;  %v365_v14 = vld [vmem:[%s1140_s5 + $0xe0] sm:$0xff]  ;;  %v347_v17 = vld [vmem:[%s1140_s5 + $0x50] sm:$0xff] }
  0x31   :  { %262 = vmatpush.msrb.mxu0 %v195_v27  ;;  %281 = vmatpush.msrb.mxu1 %v212_v28  ;;  %v398_v15 = vld [vmem:[%s1140_s5 + $0x1e8] sm:$0xff]  ;;  %v381_v16 = vld [vmem:[%s1140_s5 + $0x160] sm:$0xff]  ;;  %v364_v18 = vld [vmem:[%s1140_s5 + $0xd8] sm:$0xff] }
  0x32   :  { %321 = vmatpush.msrb.mxu3 %v244_v29  ;;  %302 = vmatpush.msrb.mxu2 %v227_v30  ;;  %v397_v19 = vld [vmem:[%s1140_s5 + $0x1e0] sm:$0xff]  ;;  %v380_v20 = vld [vmem:[%s1140_s5 + $0x158] sm:$0xff]  ;;  %v346_v21 = vld [vmem:[%s1140_s5 + $0x48] sm:$0xff] }
  0x33   :  { %263 = vmatpush.msrb.mxu0 %v194_v31  ;;  %282 = vmatpush.msrb.mxu1 %v211_v32  ;;  %v363_v22 = vld [vmem:[%s1140_s5 + $0xd0] sm:$0xff]  ;;  %v396_v23 = vld [vmem:[%s1140_s5 + $0x1d8] sm:$0xff]  ;;  %v345_v25 = vld [vmem:[%s1140_s5 + $0x40] sm:$0xff] }
  0x34   :  { %322 = vmatpush.msrb.mxu3 %v243_v33  ;;  %303 = vmatpush.msrb.mxu2 %v226_v34  ;;  %v379_v24 = vld [vmem:[%s1140_s5 + $0x150] sm:$0xff]  ;;  %v362_v26 = vld [vmem:[%s1140_s5 + $0xc8] sm:$0xff]  ;;  %v344_v28 = vld [vmem:[%s1140_s5 + $0x38] sm:$0xff] }
  0x35   :  { %264 = vmatpush.msrb.mxu0 %v193_v35  ;;  %283 = vmatpush.msrb.mxu1 %v210_v36  ;;  %v395_v27 = vld [vmem:[%s1140_s5 + $0x1d0] sm:$0xff]  ;;  %v361_v29 = vld [vmem:[%s1140_s5 + $0xc0] sm:$0xff]  ;;  %v360_v31 = vld [vmem:[%s1140_s5 + $0xb8] sm:$0xff] }
  0x36   :  { %323 = vmatpush.msrb.mxu3 %v242_v37  ;;  %304 = vmatpush.msrb.mxu2 %v225_v38  ;;  %v343_v30 = vld [vmem:[%s1140_s5 + $0x30] sm:$0xff]  ;;  %v378_v32 = vld [vmem:[%s1140_s5 + $0x148] sm:$0xff]  ;;  %v377_v36 = vld [vmem:[%s1140_s5 + $0x140] sm:$0xff] }
  0x37   :  { %265 = vmatpush.msrb.mxu0 %v192_v39  ;;  %284 = vmatpush.msrb.mxu1 %v209_v40  ;;  %v394_v33 = vld [vmem:[%s1140_s5 + $0x1c8] sm:$0xff]  ;;  %v359_v35 = vld [vmem:[%s1140_s5 + $0xb0] sm:$0xff]  ;;  %v393_v37 = vld [vmem:[%s1140_s5 + $0x1c0] sm:$0xff] }
  0x38   :  { %324 = vmatpush.msrb.mxu3 %v241_v41  ;;  %305 = vmatpush.msrb.mxu2 %v224_v42  ;;  %v342_v34 = vld [vmem:[%s1140_s5 + $0x28] sm:$0xff]  ;;  %v341_v38 = vld [vmem:[%s1140_s5 + $0x20] sm:$0xff]  ;;  %v376_v40 = vld [vmem:[%s1140_s5 + $0x138] sm:$0xff] }
  0x39   :  { %266 = vmatpush.msrb.mxu0 %v191_v43  ;;  %285 = vmatpush.msrb.mxu1 %v208_v44  ;;  %v358_v39 = vld [vmem:[%s1140_s5 + $0xa8] sm:$0xff]  ;;  %v392_v41 = vld [vmem:[%s1140_s5 + $0x1b8] sm:$0xff]  ;;  %v357_v43 = vld [vmem:[%s1140_s5 + $0xa0] sm:$0xff] }
  0x3a   :  { %325 = vmatpush.msrb.mxu3 %v240_v45  ;;  %306 = vmatpush.msrb.mxu2 %v223_v46  ;;  %v340_v42 = vld [vmem:[%s1140_s5 + $0x18] sm:$0xff]  ;;  %v375_v44 = vld [vmem:[%s1140_s5 + $0x130] sm:$0xff] }
  0x3b   :  { %267 = vmatpush.msrb.mxu0 %v190_v47  ;;  %286 = vmatpush.msrb.mxu1 %v207_v48  ;;  %v391_v45 = vld [vmem:[%s1140_s5 + $0x1b0] sm:$0xff]  ;;  %v356_v47 = vld [vmem:[%s1140_s5 + $0x98] sm:$0xff]  ;;  %v374_v48 = vld [vmem:[%s1140_s5 + $0x128] sm:$0xff] }
  0x3c   :  { %326 = vmatpush.msrb.mxu3 %v239_v49  ;;  %307 = vmatpush.msrb.mxu2 %v222_v50  ;;  %v339_v46 = vld [vmem:[%s1140_s5 + $0x10] sm:$0xff]  ;;  %v390_v49 = vld [vmem:[%s1140_s5 + $0x1a8] sm:$0xff] }
  0x3d   :  { %268 = vmatpush.msrb.mxu0 %v189_v51  ;;  %287 = vmatpush.msrb.mxu1 %v206_v52  ;;  %v338_v50 = vld [vmem:[%s1140_s5 + $0x8] sm:$0xff]  ;;  %v355_v51 = vld [vmem:[%s1140_s5 + $0x90] sm:$0xff]  ;;  %v373_v52 = vld [vmem:[%s1140_s5 + $0x120] sm:$0xff] }
  0x3e   :  { %327 = vmatpush.msrb.mxu3 %v238_v53  ;;  %308 = vmatpush.msrb.mxu2 %v221_v54  ;;  %v389_v53 = vld [vmem:[%s1140_s5 + $0x1a0] sm:$0xff] }
  0x3f   :  { %269 = vmatpush.msrb.mxu0 %v188_v55  ;;  %288 = vmatpush.msrb.mxu1 %v205_v56  ;;  %v337_v54 = vld [vmem:[%s1140_s5] sm:$0xff]  ;;  %v354_v55 = vld [vmem:[%s1140_s5 + $0x88] sm:$0xff]  ;;  %v372_v56 = vld [vmem:[%s1140_s5 + $0x118] sm:$0xff] }
  0x40   :  { %328 = vmatpush.msrb.mxu3 %v237_v57  ;;  %309 = vmatpush.msrb.mxu2 %v220_v58  ;;  %v388_v57 = vld [vmem:[%s1140_s5 + $0x198] sm:$0xff]  ;;  %v353_v58 = vld [vmem:[%s1140_s5 + $0x80] sm:$0xff] }
  0x41   :  { %270 = vmatpush.msrb.mxu0 %v187_v59  ;;  %289 = vmatpush.msrb.mxu1 %v204_v60  ;;  %v371_v59 = vld [vmem:[%s1140_s5 + $0x110] sm:$0xff] }
  0x42   :  { %329 = vmatpush.msrb.mxu3 %v236_v62  ;;  %310 = vmatpush.msrb.mxu2 %v219_v0  ;;  %v387_v60 = vld [vmem:[%s1140_s5 + $0x190] sm:$0xff]  ;;  %v386_v62 = vld [vmem:[%s1140_s5 + $0x188] sm:$0xff]  ;;  %v385_v0 = vld [vmem:[%s1140_s5 + $0x180] sm:$0xff] }
  0x43   :  { %405 = vmatpush.msra.mxu0 %v352_v61  ;;  %290 = vmatpush.msrb.mxu1 %v203_v63  ;;  %v370_v61 = vld [vmem:[%s1140_s5 + $0x108] sm:$0xff]  ;;  %v369_v63 = vld [vmem:[%s1140_s5 + $0x100] sm:$0xff] }
  0x44   :  { %330 = vmatpush.msrb.mxu3 %v235_v3  ;;  %445 = vmatpush.msra.mxu2 %v384_v4 }
  0x45   :  { %406 = vmatpush.msra.mxu0 %v351_v1  ;;  %425 = vmatpush.msra.mxu1 %v368_v2  ;;  %v93_v1 = vld [vmem:[%s1141_s2] sm:$0xf] }
  0x46   :  { %465 = vmatpush.msra.mxu3 %v400_v7  ;;  %446 = vmatpush.msra.mxu2 %v383_v8  ;;  %v95_v2 = vperm.slane %v93_v1, 0  ;;  %v96_v4 = vperm.slane %v93_v1, 1 }
  0x47   :  { %407 = vmatpush.msra.mxu0 %v350_v5  ;;  %426 = vmatpush.msra.mxu1 %v367_v6 }
  0x48   :  { %466 = vmatpush.msra.mxu3 %v399_v11  ;;  %447 = vmatpush.msra.mxu2 %v382_v12 }
  0x49   :  { %408 = vmatpush.msra.mxu0 %v349_v9  ;;  %427 = vmatpush.msra.mxu1 %v366_v10  ;;  %v97_v9 = vperm.slane %v93_v1, 2  ;;  %v98_v10 = vperm.slane %v93_v1, 3 }
  0x4a   :  { %467 = vmatpush.msra.mxu3 %v398_v15  ;;  %448 = vmatpush.msra.mxu2 %v381_v16 }
  0x4b   :  { %409 = vmatpush.msra.mxu0 %v348_v13  ;;  %428 = vmatpush.msra.mxu1 %v365_v14 }
  0x4c   :  { %468 = vmatpush.msra.mxu3 %v397_v19  ;;  %449 = vmatpush.msra.mxu2 %v380_v20 }
  0x4d   :  { %410 = vmatpush.msra.mxu0 %v347_v17  ;;  %429 = vmatpush.msra.mxu1 %v364_v18  ;;  %v495_v18 = vld [vmem:[%s1139_s4] ss:$0 sm:$0xff] }
  0x4e   :  { %469 = vmatpush.msra.mxu3 %v396_v23  ;;  %450 = vmatpush.msra.mxu2 %v379_v24  ;;  %v496_v23 = vld [vmem:[%s1142_s6] ss:$0 sm:$0xff] }
  0x4f   :  { %411 = vmatpush.msra.mxu0 %v346_v21  ;;  %430 = vmatpush.msra.mxu1 %v363_v22 }
  0x50   :  { %470 = vmatpush.msra.mxu3 %v395_v27  ;;  %451 = vmatpush.msra.mxu2 %v378_v32 }
  0x51   :  { %412 = vmatpush.msra.mxu0 %v345_v25  ;;  %431 = vmatpush.msra.mxu1 %v362_v26 }
  0x52   :  { %471 = vmatpush.msra.mxu3 %v394_v33  ;;  %452 = vmatpush.msra.mxu2 %v377_v36 }
  0x53   :  { %413 = vmatpush.msra.mxu0 %v344_v28  ;;  %432 = vmatpush.msra.mxu1 %v361_v29 }
  0x54   :  { %472 = vmatpush.msra.mxu3 %v393_v37  ;;  %453 = vmatpush.msra.mxu2 %v376_v40 }
  0x55   :  { %414 = vmatpush.msra.mxu0 %v343_v30  ;;  %433 = vmatpush.msra.mxu1 %v360_v31 }
  0x56   :  { %473 = vmatpush.msra.mxu3 %v392_v41  ;;  %454 = vmatpush.msra.mxu2 %v375_v44 }
  0x57   :  { %415 = vmatpush.msra.mxu0 %v342_v34  ;;  %434 = vmatpush.msra.mxu1 %v359_v35 }
  0x58   :  { %474 = vmatpush.msra.mxu3 %v391_v45  ;;  %455 = vmatpush.msra.mxu2 %v374_v48 }
  0x59   :  { %416 = vmatpush.msra.mxu0 %v341_v38  ;;  %435 = vmatpush.msra.mxu1 %v358_v39 }
  0x5a   :  { %475 = vmatpush.msra.mxu3 %v390_v49  ;;  %456 = vmatpush.msra.mxu2 %v373_v52 }
  0x5b   :  { %417 = vmatpush.msra.mxu0 %v340_v42  ;;  %436 = vmatpush.msra.mxu1 %v357_v43 }
  0x5c   :  { %476 = vmatpush.msra.mxu3 %v389_v53  ;;  %457 = vmatpush.msra.mxu2 %v372_v56 }
  0x5d   :  { %418 = vmatpush.msra.mxu0 %v339_v46  ;;  %437 = vmatpush.msra.mxu1 %v356_v47 }
  0x5e   :  { %477 = vmatpush.msra.mxu3 %v388_v57  ;;  %458 = vmatpush.msra.mxu2 %v371_v59 }
  0x5f   :  { %419 = vmatpush.msra.mxu0 %v338_v50  ;;  %438 = vmatpush.msra.mxu1 %v355_v51 }
  0x60   :  { %478 = vmatpush.msra.mxu3 %v387_v60  ;;  %459 = vmatpush.msra.mxu2 %v370_v61 }
  0x61   :  { %420 = vmatpush.msra.mxu0 %v337_v54  ;;  %439 = vmatpush.msra.mxu1 %v354_v55 }
  0x62   :  { %479 = vmatpush.msra.mxu3 %v386_v62  ;;  %460 = vmatpush.msra.mxu2 %v369_v63 }
  0x63   :  { %440 = vmatpush.msra.mxu1 %v353_v58 }
  0x64   :  { %480 = vmatpush.msra.mxu3 %v385_v0 }
  0x9e   :  { %v120_v3 = vpop.f32.mrf.mxu0 }
  0x9f   :  { %v121_v5 = vadd.f32 %v120_v3, %v95_v2 }
  0xa1   :  { %v183_v6 = vmax.f32 %v121_v5, 0.0  ;;  %v140_v7 = vpop.f32.mrf.mxu1 }
  0xa2   :  { %v141_v8 = vadd.f32 %v140_v7, %v96_v4 }
  0xa3   :  { %271 = vmatmul.f32.vlgmr.msrb.gmra.mxu0 %v183_v6 }
  0xa4   :  { %v184_v11 = vmax.f32 %v141_v8, 0.0 }
  0xa5   :  { %v160_v12 = vpop.f32.mrf.mxu2  ;;  %v180_v13 = vpop.f32.mrf.mxu3 }
  0xa6   :  { %v161_v14 = vadd.f32 %v160_v12, %v97_v9  ;;  %v181_v15 = vadd.f32 %v180_v13, %v98_v10  ;;  %291 = vmatmul.f32.vlgmr.msrb.gmra.mxu1 %v184_v11 }
  0xa8   :  { %v185_v16 = vmax.f32 %v161_v14, 0.0  ;;  %v186_v17 = vmax.f32 %v181_v15, 0.0 }
  0xaa   :  { %311 = vmatmul.f32.vlgmr.msrb.gmra.mxu2 %v185_v16  ;;  %331 = vmatmul.f32.vlgmr.msrb.gmra.mxu3 %v186_v17 }
  0xab   :  { %421 = vmatmul.f32.vlgmr.msra.gmra.mxu0 %v183_v6 }
  0xae   :  { %441 = vmatmul.f32.vlgmr.msra.gmra.mxu1 %v184_v11 }
  0xb2   :  { %461 = vmatmul.f32.vlgmr.msra.gmra.mxu2 %v185_v16  ;;  %481 = vmatmul.f32.vlgmr.msra.gmra.mxu3 %v186_v17 }
 0x120   :  { %v272_v19 = vpop.f32.mrf.mxu0 }
 0x121   :  { %v273_v20 = vadd.f32 %v495_v18, %v272_v19 }
 0x123   :  { %v292_v21 = vpop.f32.mrf.mxu1 }
 0x124   :  { %v293_v22 = vadd.f32 %v292_v21, %v273_v20 }
 0x128   :  { %v422_v24 = vpop.f32.mrf.mxu0 }
 0x129   :  { %v423_v28 = vadd.f32 %v496_v23, %v422_v24 }
 0x12b   :  { %v442_v30 = vpop.f32.mrf.mxu1 }
 0x12c   :  { %v443_v31 = vadd.f32 %v442_v30, %v423_v28 }
 0x12d   :  { %v312_v25 = vpop.f32.mrf.mxu2  ;;  %v332_v26 = vpop.f32.mrf.mxu3 }
 0x12e   :  { %v313_v27 = vadd.f32 %v312_v25, %v293_v22 }
 0x130   :  { %v333_v29 = vadd.f32 %v332_v26, %v313_v27 }
 0x132   :  { %336 = vst.msk [vmem:[%s1143_s7] sm:$0xff] %vm335_vm0, %v333_v29 }
 0x135   :  { %v462_v32 = vpop.f32.mrf.mxu2  ;;  %v482_v34 = vpop.f32.mrf.mxu3 }
 0x136   :  { %v463_v33 = vadd.f32 %v462_v32, %v443_v31 }
 0x138   :  { %v483_v35 = vadd.f32 %v482_v34, %v463_v33 }
 0x13a   :  { %486 = vst.msk [vmem:[%s1144_s8] sm:$0xff] %vm485_vm1, %v483_v35 }

</bundles_post_ra>
